<compile_context>
chip_gen: v5e
topology: v5e:2x2
jax: 0.10.0
libtpu: 0.0.40
codegen_flags: <defaults>
</compile_context>

<pallas_src>
import jax
import jax.numpy as jnp
from jax.experimental import pallas as pl
from jax.experimental.pallas import tpu as pltpu

BN_EPS = 1e-5
NEG_SLOPE = 0.2


def _leaky(v):
    return jnp.where(v >= 0, v, NEG_SLOPE * v)


def _small_k_matmul(w_cols_ref, x, k):
    """(Cout, k) @ (k, TN) as k unrolled VPU broadcast multiply-adds.

    For tiny K (K = d_points = 4) the RHS-stationary MXU lowering of
    jnp.dot(w, x) reloads the stationary operand every 128/256 lanes with only
    a handful of LHS pushes in between; k broadcasted FMAs on the VPU keep the
    (Cout, TN) layout lane-dense and skip the MXU entirely.  Falls back to the
    MXU for larger K.  `w_cols_ref` may carry extra trailing columns (fused
    bias); only the first k are used here.
    """
    if k > 8:
        return jnp.dot(w_cols_ref[:, :k], x, preferred_element_type=jnp.float32)
    y = w_cols_ref[:, 0:1] * x[0:1, :]
    for i in range(1, k):
        y = y + w_cols_ref[:, i:i + 1] * x[i:i + 1, :]
    return y


# ---------------- kernels ----------------

def _stats_x_kernel(x_ref, stat_ref):
    # x_ref: (1, Cin, TN); stat_ref: (1, 1, Cin, 1+Cin)
    #   stat[..., 0]  = per-tile sum_x          (Cin,)
    #   stat[..., 1:] = per-tile centered Gram  (Cin, Cin)
    x = x_ref[0, :, :].astype(jnp.float32)                      # (Cin, TN)
    m = jnp.float32(x.shape[1])
    s = jnp.sum(x, axis=1, keepdims=True)                       # (Cin, 1)
    d = x - s / m
    # Tiny (Cin x Cin) Gram via broadcast + lane reduction (no MXU needed).
    g = jnp.sum(d[:, None, :] * d[None, :, :], axis=-1)         # (Cin, Cin)
    stat_ref[0, 0, :, 0:1] = s
    stat_ref[0, 0, :, 1:] = g


def _mlp_stats_kernel(x_ref, w1aug_ref, w2_ref, y2_ref, stat_ref):
    # x_ref: (1, Cin, TN); w1aug_ref: (Cmid, Cin+1) = [scale1-folded W1 | shift1]
    # w2_ref: (Cin, Cmid); y2_ref: (1, Cin, TN); stat_ref: (1, 1, Cin, 2)
    x = x_ref[0, :, :].astype(jnp.float32)                      # (Cin, TN)
    cin = x.shape[0]
    y1 = _small_k_matmul(w1aug_ref, x, cin) + w1aug_ref[:, cin:cin + 1]
    y1 = _leaky(y1)                                             # (Cmid, TN)
    # K = Cmid contraction: leave on the MXU.
    # TODO(synk): verify in a bundle dump whether weight-reload churn on this
    # (Cin x Cmid) x (Cmid x TN) dot is the saturating slot; if so, move it to
    # VPU FMAs as well.
    y2 = jnp.dot(w2_ref[...], y1, preferred_element_type=jnp.float32)  # (Cin, TN)
    y2_ref[0, :, :] = y2.astype(y2_ref.dtype)
    m = jnp.float32(y2.shape[1])
    s = jnp.sum(y2, axis=1, keepdims=True)                      # (Cin, 1)
    d = y2 - s / m
    stat_ref[0, 0, :, 0:1] = s
    stat_ref[0, 0, :, 1:2] = jnp.sum(d * d, axis=1, keepdims=True)


def _finalize_kernel(x_ref, y2_ref, aff2_ref, o_ref):
    # Pure elementwise: BN2 (folded scale/shift) + residual + LeakyReLU.
    x = x_ref[0, :, :].astype(jnp.float32)
    y2 = y2_ref[0, :, :].astype(jnp.float32)
    y2 = y2 * aff2_ref[:, 0:1] + aff2_ref[:, 1:2]
    o_ref[0, :, :] = _leaky(y2 + x).astype(o_ref.dtype)


# ---------------- host-side glue ----------------

def _choose_tile_n(n, cap=8192):
    """Largest multiple-of-128 tile <= cap that divides N; else full N."""
    if n <= cap:
        return n
    best = None
    t = 128
    while t <= cap:
        if n % t == 0:
            best = t
        t += 128
    # TODO(synk): for large N with no multiple-of-128 divisor, pad N to a
    # multiple of 128 and mask padded columns out of the stats (weighting Chan
    # partials by true per-tile counts) instead of this whole-N fallback.
    return best if best is not None else n


def _bn1_from_x_moments(stats1, m_tile, m_total, w1, gamma, beta):
    """BN1 batch stats of y1 = W1 @ x from raw-x per-tile moments.

    stats1: (B, T, Cin, 1+Cin) with [...,0] = tile sum_x and [...,1:] = tile-
    centered Gram.  Chan combine -> mean_x / Cov_x, then mean1 = W1 @ mean_x,
    var1 = diag(W1 Cov_x W1^T).  Returns folded per-channel (scale, shift).
    """
    s = stats1[..., 0].astype(jnp.float32)                       # (B, T, Cin)
    g = stats1[..., 1:].astype(jnp.float32)                      # (B, T, Cin, Cin)
    m_tile = jnp.float32(m_tile)
    m_total = jnp.float32(m_total)
    mean_x = jnp.sum(s, axis=(0, 1)) / m_total                   # (Cin,)
    dmu = s / m_tile - mean_x                                    # (B, T, Cin)
    gram = jnp.sum(g, axis=(0, 1)) + m_tile * jnp.einsum('btc,btd->cd', dmu, dmu)
    cov = gram / m_total                                         # biased Cov_x
    mean1 = w1 @ mean_x                                          # (Cmid,)
    var1 = jnp.maximum(jnp.sum((w1 @ cov) * w1, axis=1), 0.0)    # (Cmid,)
    scale = gamma.astype(jnp.float32) * jax.lax.rsqrt(var1 + BN_EPS)
    shift = beta.astype(jnp.float32) - mean1 * scale
    return scale, shift


def _bn2_from_partials(stats2, m_tile, m_total, gamma, beta):
    """Chan-combine per-tile (sum, centered SSE) of y2_pre; fold BN2 affine."""
    s = stats2[..., 0].astype(jnp.float32)                       # (B, T, Cin)
    sse = stats2[..., 1].astype(jnp.float32)
    m_tile = jnp.float32(m_tile)
    m_total = jnp.float32(m_total)
    mean = jnp.sum(s, axis=(0, 1)) / m_total
    dmu = s / m_tile - mean
    var = (jnp.sum(sse, axis=(0, 1))
           + m_tile * jnp.sum(dmu * dmu, axis=(0, 1))) / m_total
    var = jnp.maximum(var, 0.0)
    scale = gamma.astype(jnp.float32) * jax.lax.rsqrt(var + BN_EPS)
    shift = beta.astype(jnp.float32) - mean * scale
    return scale, shift


def res_mlp_block1d(x, conv1_w, bn1_gamma, bn1_beta, conv2_w, bn2_gamma, bn2_beta):
    """x: (B, d_points, N) f32; conv1_w: (d_model, d_points, 1);
    conv2_w: (d_points, d_model, 1); bn params 1-D. Returns (B, d_points, N)."""
    B, Cin, N = x.shape
    Cmid = conv1_w.shape[0]
    w1 = conv1_w.reshape(Cmid, Cin).astype(jnp.float32)
    w2 = conv2_w.reshape(Cin, Cmid).astype(jnp.float32)

    tn = _choose_tile_n(N)
    T = N // tn
    grid = (B, T)

    x_spec = pl.BlockSpec((1, Cin, tn), lambda b, t: (b, 0, t))
    w1aug_spec = pl.BlockSpec((Cmid, Cin + 1), lambda b, t: (0, 0))
    w2_spec = pl.BlockSpec((Cin, Cmid), lambda b, t: (0, 0))
    aff2_spec = pl.BlockSpec((Cin, 2), lambda b, t: (0, 0))
    stat1_spec = pl.BlockSpec((1, 1, Cin, 1 + Cin), lambda b, t: (b, t, 0, 0))
    stat2_spec = pl.BlockSpec((1, 1, Cin, 2), lambda b, t: (b, t, 0, 0))

    cparams = pltpu.CompilerParams(
        dimension_semantics=("parallel", "parallel"))

    # Pass 1: per-tile raw-x moments (no matmul; DMA-bound).
    stats1 = pl.pallas_call(
        _stats_x_kernel,
        out_shape=jax.ShapeDtypeStruct((B, T, Cin, 1 + Cin), jnp.float32),
        grid=grid,
        in_specs=[x_spec],
        out_specs=stat1_spec,
        compiler_params=cparams,
    )(x)
    scale1, shift1 = _bn1_from_x_moments(stats1, tn, B * N, w1, bn1_gamma, bn1_beta)
    # Fold BN1 scale into W1 rows; carry shift1 as an extra fused column.
    w1aug = jnp.concatenate([scale1[:, None] * w1, shift1[:, None]], axis=1)

    # Pass 2: compute + cache y2_pre, plus per-tile stats of y2_pre.
    y2_pre, stats2 = pl.pallas_call(
        _mlp_stats_kernel,
        out_shape=(jax.ShapeDtypeStruct((B, Cin, N), jnp.float32),
                   jax.ShapeDtypeStruct((B, T, Cin, 2), jnp.float32)),
        grid=grid,
        in_specs=[x_spec, w1aug_spec, w2_spec],
        out_specs=(x_spec, stat2_spec),
        compiler_params=cparams,
    )(x, w1aug, w2)
    scale2, shift2 = _bn2_from_partials(stats2, tn, B * N, bn2_gamma, bn2_beta)
    aff2 = jnp.stack([scale2, shift2], axis=1)                   # (Cin, 2)

    # Pass 3: elementwise BN2 + residual + LeakyReLU (no matmul recompute).
    out = pl.pallas_call(
        _finalize_kernel,
        out_shape=jax.ShapeDtypeStruct((B, Cin, N), x.dtype),
        grid=grid,
        in_specs=[x_spec, x_spec, aff2_spec],
        out_specs=x_spec,
        compiler_params=cparams,
    )(x, y2_pre, aff2)
    return out


# ---------------- pure-JAX reference (correctness check) ----------------

def _reference(x, conv1_w, g1, b1, conv2_w, g2, b2):
    B, Cin, N = x.shape
    Cmid = conv1_w.shape[0]
    w1 = conv1_w.reshape(Cmid, Cin)
    w2 = conv2_w.reshape(Cin, Cmid)

    def bn(y, g, b):  # training-mode BatchNorm1d over (batch, spatial)
        mean = jnp.mean(y, axis=(0, 2), keepdims=True)
        var = jnp.mean((y - mean) ** 2, axis=(0, 2), keepdims=True)
        return (y - mean) * jax.lax.rsqrt(var + BN_EPS) * g.reshape(1, -1, 1) \
            + b.reshape(1, -1, 1)

    y1 = _leaky(bn(jnp.einsum('oc,bcn->bon', w1, x), g1, b1))
    y2 = bn(jnp.einsum('oc,bcn->bon', w2, y1), g2, b2)
    return _leaky(y2 + x)


if __name__ == "__main__":
    # Small shapes consistent with the module: batch=2, d_points=4, N=16, d_model=32
    B, d_points, N, d_model = 2, 4, 16, 32

    key = jax.random.PRNGKey(0)
    kx, k1, k2, kg1, kb1, kg2, kb2 = jax.random.split(key, 7)

    x = jax.random.normal(kx, (B, d_points, N), dtype=jnp.float32)
    conv1_w = 0.3 * jax.random.normal(k1, (d_model, d_points, 1), dtype=jnp.float32)
    conv2_w = 0.3 * jax.random.normal(k2, (d_points, d_model, 1), dtype=jnp.float32)
    bn1_gamma = 1.0 + 0.1 * jax.random.normal(kg1, (d_model,), dtype=jnp.float32)
    bn1_beta = 0.1 * jax.random.normal(kb1, (d_model,), dtype=jnp.float32)
    bn2_gamma = 1.0 + 0.1 * jax.random.normal(kg2, (d_points,), dtype=jnp.float32)
    bn2_beta = 0.1 * jax.random.normal(kb2, (d_points,), dtype=jnp.float32)

    fwd = jax.jit(res_mlp_block1d)
    out = fwd(x, conv1_w, bn1_gamma, bn1_beta, conv2_w, bn2_gamma, bn2_beta)
    out = jax.block_until_ready(out)
    assert out.shape == (B, d_points, N), out.shape

    ref = _reference(x, conv1_w, bn1_gamma, bn1_beta, conv2_w, bn2_gamma, bn2_beta)
    err = float(jnp.max(jnp.abs(out - ref)))
    assert jnp.allclose(out, ref, rtol=2e-3, atol=2e-3), err

    print("KERNEL_OK")
</pallas_src>

<mosaic_0001>
module attributes {stable_mosaic.version = 11 : i64} {
  func.func @_stats_x_kernel(%arg0: i32, %arg1: i32, %arg2: memref<1x4x16xf32, #tpu.memory_space<vmem>>, %arg3: memref<1x1x4x5xf32, #tpu.memory_space<vmem>>) attributes {dimension_semantics = [#tpu.dimension_semantics<parallel>, #tpu.dimension_semantics<parallel>], iteration_bounds = array<i64: 2, 1>, scalar_prefetch = 0 : i64, scratch_operands = 0 : i64, tpu.core_type = #tpu.core_type<tc>, window_params = [{transform_indices = @transform_0, window_bounds = array<i64: 1, 4, 16>}, {transform_indices = @transform_1, window_bounds = array<i64: 1, 1, 4, 5>}]} {
    %c0 = arith.constant 0 : index
    %c0_0 = arith.constant 0 : index
    %c0_1 = arith.constant 0 : index
    %0 = vector.load %arg2[%c0, %c0_0, %c0_1] : memref<1x4x16xf32, #tpu.memory_space<vmem>>, vector<1x4x16xf32>
    %1 = vector.shape_cast %0 : vector<1x4x16xf32> to vector<4x16xf32>
    %cst = arith.constant dense<0.000000e+00> : vector<4xf32>
    %2 = vector.multi_reduction <add>, %1, %cst [1] : vector<4x16xf32> to vector<4xf32>
    %3 = vector.shape_cast %2 : vector<4xf32> to vector<4x1xf32>
    %cst_2 = arith.constant 1.600000e+01 : f32
    %4 = vector.broadcast %cst_2 : f32 to vector<4x1xf32>
    %5 = arith.divf %3, %4 : vector<4x1xf32>
    %6 = vector.broadcast %5 : vector<4x1xf32> to vector<4x16xf32>
    %7 = arith.subf %1, %6 : vector<4x16xf32>
    %8 = vector.shape_cast %7 : vector<4x16xf32> to vector<4x1x16xf32>
    %9 = vector.shape_cast %7 : vector<4x16xf32> to vector<1x4x16xf32>
    %10 = vector.broadcast %8 : vector<4x1x16xf32> to vector<4x4x16xf32>
    %11 = vector.broadcast %9 : vector<1x4x16xf32> to vector<4x4x16xf32>
    %12 = arith.mulf %10, %11 : vector<4x4x16xf32>
    %cst_3 = arith.constant dense<0.000000e+00> : vector<4x4xf32>
    %13 = vector.multi_reduction <add>, %12, %cst_3 [2] : vector<4x4x16xf32> to vector<4x4xf32>
    %c0_4 = arith.constant 0 : index
    %c0_5 = arith.constant 0 : index
    %c0_6 = arith.constant 0 : index
    %c0_7 = arith.constant 0 : index
    %14 = vector.load %arg3[%c0_4, %c0_5, %c0_6, %c0_7] : memref<1x1x4x5xf32, #tpu.memory_space<vmem>>, vector<1x1x4x1xf32>
    %15 = vector.shape_cast %14 : vector<1x1x4x1xf32> to vector<4x1xf32>
    %16 = vector.shape_cast %3 : vector<4x1xf32> to vector<1x1x4x1xf32>
    tpu.vector_store %arg3[%c0_4, %c0_5, %c0_6, %c0_7], %16 {strides = array<i32>} : memref<1x1x4x5xf32, #tpu.memory_space<vmem>>, vector<1x1x4x1xf32>,
    %c0_8 = arith.constant 0 : index
    %c0_9 = arith.constant 0 : index
    %c0_10 = arith.constant 0 : index
    %c1 = arith.constant 1 : index
    %17 = vector.load %arg3[%c0_8, %c0_9, %c0_10, %c1] : memref<1x1x4x5xf32, #tpu.memory_space<vmem>>, vector<1x1x4x4xf32>
    %18 = vector.shape_cast %17 : vector<1x1x4x4xf32> to vector<4x4xf32>
    %19 = vector.shape_cast %13 : vector<4x4xf32> to vector<1x1x4x4xf32>
    tpu.vector_store %arg3[%c0_8, %c0_9, %c0_10, %c1], %19 {strides = array<i32>} : memref<1x1x4x5xf32, #tpu.memory_space<vmem>>, vector<1x1x4x4xf32>,
    return
  }
  func.func @transform_0(%arg0: i32, %arg1: i32) -> (i32, i32, i32) {
    %c0_i32 = arith.constant 0 : i32
    %c0_i32_0 = arith.constant 0 : i32
    return %arg0, %c0_i32, %arg1 : i32, i32, i32
  }
  func.func @transform_1(%arg0: i32, %arg1: i32) -> (i32, i32, i32, i32) {
    %c0_i32 = arith.constant 0 : i32
    %c0_i32_0 = arith.constant 0 : i32
    %c0_i32_1 = arith.constant 0 : i32
    return %arg0, %arg1, %c0_i32, %c0_i32_0 : i32, i32, i32, i32
  }
}

module attributes {stable_mosaic.version = 11 : i64} {
  func.func @_mlp_stats_kernel(%arg0: i32, %arg1: i32, %arg2: memref<1x4x16xf32, #tpu.memory_space<vmem>>, %arg3: memref<32x5xf32, #tpu.memory_space<vmem>>, %arg4: memref<4x32xf32, #tpu.memory_space<vmem>>, %arg5: memref<1x4x16xf32, #tpu.memory_space<vmem>>, %arg6: memref<1x1x4x2xf32, #tpu.memory_space<vmem>>) attributes {dimension_semantics = [#tpu.dimension_semantics<parallel>, #tpu.dimension_semantics<parallel>], iteration_bounds = array<i64: 2, 1>, scalar_prefetch = 0 : i64, scratch_operands = 0 : i64, tpu.core_type = #tpu.core_type<tc>, window_params = [{transform_indices = @transform_0, window_bounds = array<i64: 1, 4, 16>}, {pipeline_mode = #tpu.pipeline_mode<synchronous>, transform_indices = @transform_1, window_bounds = array<i64: 32, 5>}, {pipeline_mode = #tpu.pipeline_mode<synchronous>, transform_indices = @transform_2, window_bounds = array<i64: 4, 32>}, {transform_indices = @transform_3, window_bounds = array<i64: 1, 4, 16>}, {transform_indices = @transform_4, window_bounds = array<i64: 1, 1, 4, 2>}]} {
    %c0 = arith.constant 0 : index
    %c0_0 = arith.constant 0 : index
    %c0_1 = arith.constant 0 : index
    %0 = vector.load %arg2[%c0, %c0_0, %c0_1] : memref<1x4x16xf32, #tpu.memory_space<vmem>>, vector<1x4x16xf32>
    %1 = vector.shape_cast %0 : vector<1x4x16xf32> to vector<4x16xf32>
    %c0_2 = arith.constant 0 : index
    %c0_3 = arith.constant 0 : index
    %2 = vector.load %arg3[%c0_2, %c0_3] : memref<32x5xf32, #tpu.memory_space<vmem>>, vector<32x1xf32>
    %3 = vector.extract_strided_slice %1 {offsets = [0, 0], sizes = [1, 16], strides = [1, 1]} : vector<4x16xf32> to vector<1x16xf32>
    %4 = vector.broadcast %2 : vector<32x1xf32> to vector<32x16xf32>
    %5 = vector.broadcast %3 : vector<1x16xf32> to vector<32x16xf32>
    %6 = arith.mulf %4, %5 : vector<32x16xf32>
    %c0_4 = arith.constant 0 : index
    %c1 = arith.constant 1 : index
    %7 = vector.load %arg3[%c0_4, %c1] : memref<32x5xf32, #tpu.memory_space<vmem>>, vector<32x1xf32>
    %8 = vector.extract_strided_slice %1 {offsets = [1, 0], sizes = [1, 16], strides = [1, 1]} : vector<4x16xf32> to vector<1x16xf32>
    %9 = vector.broadcast %7 : vector<32x1xf32> to vector<32x16xf32>
    %10 = vector.broadcast %8 : vector<1x16xf32> to vector<32x16xf32>
    %11 = arith.mulf %9, %10 : vector<32x16xf32>
    %12 = arith.addf %6, %11 : vector<32x16xf32>
    %c0_5 = arith.constant 0 : index
    %c2 = arith.constant 2 : index
    %13 = vector.load %arg3[%c0_5, %c2] : memref<32x5xf32, #tpu.memory_space<vmem>>, vector<32x1xf32>
    %14 = vector.extract_strided_slice %1 {offsets = [2, 0], sizes = [1, 16], strides = [1, 1]} : vector<4x16xf32> to vector<1x16xf32>
    %15 = vector.broadcast %13 : vector<32x1xf32> to vector<32x16xf32>
    %16 = vector.broadcast %14 : vector<1x16xf32> to vector<32x16xf32>
    %17 = arith.mulf %15, %16 : vector<32x16xf32>
    %18 = arith.addf %12, %17 : vector<32x16xf32>
    %c0_6 = arith.constant 0 : index
    %c3 = arith.constant 3 : index
    %19 = vector.load %arg3[%c0_6, %c3] : memref<32x5xf32, #tpu.memory_space<vmem>>, vector<32x1xf32>
    %20 = vector.extract_strided_slice %1 {offsets = [3, 0], sizes = [1, 16], strides = [1, 1]} : vector<4x16xf32> to vector<1x16xf32>
    %21 = vector.broadcast %19 : vector<32x1xf32> to vector<32x16xf32>
    %22 = vector.broadcast %20 : vector<1x16xf32> to vector<32x16xf32>
    %23 = arith.mulf %21, %22 : vector<32x16xf32>
    %24 = arith.addf %18, %23 : vector<32x16xf32>
    %c0_7 = arith.constant 0 : index
    %c4 = arith.constant 4 : index
    %25 = vector.load %arg3[%c0_7, %c4] : memref<32x5xf32, #tpu.memory_space<vmem>>, vector<32x1xf32>
    %26 = vector.broadcast %25 : vector<32x1xf32> to vector<32x16xf32>
    %27 = arith.addf %24, %26 : vector<32x16xf32>
    %cst = arith.constant 0.000000e+00 : f32
    %28 = vector.broadcast %cst : f32 to vector<32x16xf32>
    %29 = arith.cmpf oge, %27, %28 : vector<32x16xf32>
    %cst_8 = arith.constant 2.000000e-01 : f32
    %30 = vector.broadcast %cst_8 : f32 to vector<32x16xf32>
    %31 = arith.mulf %30, %27 : vector<32x16xf32>
    %32 = arith.select %29, %27, %31 : vector<32x16xi1>, vector<32x16xf32>
    %c0_9 = arith.constant 0 : index
    %c0_10 = arith.constant 0 : index
    %33 = vector.load %arg4[%c0_9, %c0_10] : memref<4x32xf32, #tpu.memory_space<vmem>>, vector<4x32xf32>
    %cst_11 = arith.constant dense<0.000000e+00> : vector<4x16xf32>
    %34 = tpu.matmul %33, %32, %cst_11 {dimension_numbers = #tpu.dot_dimension_numbers<[1], [0], [0], [1], [0, 0, 1, 1], [], []>} : vector<4x32xf32>, vector<32x16xf32>, vector<4x16xf32> -> vector<4x16xf32>
    %c0_12 = arith.constant 0 : index
    %c0_13 = arith.constant 0 : index
    %c0_14 = arith.constant 0 : index
    %35 = vector.load %arg5[%c0_12, %c0_13, %c0_14] : memref<1x4x16xf32, #tpu.memory_space<vmem>>, vector<1x4x16xf32>
    %36 = vector.shape_cast %35 : vector<1x4x16xf32> to vector<4x16xf32>
    %37 = vector.shape_cast %34 : vector<4x16xf32> to vector<1x4x16xf32>
    tpu.vector_store %arg5[%c0_12, %c0_13, %c0_14], %37 {strides = array<i32>} : memref<1x4x16xf32, #tpu.memory_space<vmem>>, vector<1x4x16xf32>,
    %cst_15 = arith.constant dense<0.000000e+00> : vector<4xf32>
    %38 = vector.multi_reduction <add>, %34, %cst_15 [1] : vector<4x16xf32> to vector<4xf32>
    %39 = vector.shape_cast %38 : vector<4xf32> to vector<4x1xf32>
    %cst_16 = arith.constant 1.600000e+01 : f32
    %40 = vector.broadcast %cst_16 : f32 to vector<4x1xf32>
    %41 = arith.divf %39, %40 : vector<4x1xf32>
    %42 = vector.broadcast %41 : vector<4x1xf32> to vector<4x16xf32>
    %43 = arith.subf %34, %42 : vector<4x16xf32>
    %c0_17 = arith.constant 0 : index
    %c0_18 = arith.constant 0 : index
    %c0_19 = arith.constant 0 : index
    %c0_20 = arith.constant 0 : index
    %44 = vector.load %arg6[%c0_17, %c0_18, %c0_19, %c0_20] : memref<1x1x4x2xf32, #tpu.memory_space<vmem>>, vector<1x1x4x1xf32>
    %45 = vector.shape_cast %44 : vector<1x1x4x1xf32> to vector<4x1xf32>
    %46 = vector.shape_cast %39 : vector<4x1xf32> to vector<1x1x4x1xf32>
    tpu.vector_store %arg6[%c0_17, %c0_18, %c0_19, %c0_20], %46 {strides = array<i32>} : memref<1x1x4x2xf32, #tpu.memory_space<vmem>>, vector<1x1x4x1xf32>,
    %47 = arith.mulf %43, %43 : vector<4x16xf32>
    %cst_21 = arith.constant dense<0.000000e+00> : vector<4xf32>
    %48 = vector.multi_reduction <add>, %47, %cst_21 [1] : vector<4x16xf32> to vector<4xf32>
    %49 = vector.shape_cast %48 : vector<4xf32> to vector<4x1xf32>
    %c0_22 = arith.constant 0 : index
    %c0_23 = arith.constant 0 : index
    %c0_24 = arith.constant 0 : index
    %c1_25 = arith.constant 1 : index
    %50 = vector.load %arg6[%c0_22, %c0_23, %c0_24, %c1_25] : memref<1x1x4x2xf32, #tpu.memory_space<vmem>>, vector<1x1x4x1xf32>
    %51 = vector.shape_cast %50 : vector<1x1x4x1xf32> to vector<4x1xf32>
    %52 = vector.shape_cast %49 : vector<4x1xf32> to vector<1x1x4x1xf32>
    tpu.vector_store %arg6[%c0_22, %c0_23, %c0_24, %c1_25], %52 {strides = array<i32>} : memref<1x1x4x2xf32, #tpu.memory_space<vmem>>, vector<1x1x4x1xf32>,
    return
  }
  func.func @transform_0(%arg0: i32, %arg1: i32) -> (i32, i32, i32) {
    %c0_i32 = arith.constant 0 : i32
    %c0_i32_0 = arith.constant 0 : i32
    return %arg0, %c0_i32, %arg1 : i32, i32, i32
  }
  func.func @transform_1(%arg0: i32, %arg1: i32) -> (i32, i32) {
    %c0_i32 = arith.constant 0 : i32
    %c0_i32_0 = arith.constant 0 : i32
    %c0_i32_1 = arith.constant 0 : i32
    return %c0_i32, %c0_i32_0 : i32, i32
  }
  func.func @transform_2(%arg0: i32, %arg1: i32) -> (i32, i32) {
    %c0_i32 = arith.constant 0 : i32
    %c0_i32_0 = arith.constant 0 : i32
    %c0_i32_1 = arith.constant 0 : i32
    return %c0_i32, %c0_i32_0 : i32, i32
  }
  func.func @transform_3(%arg0: i32, %arg1: i32) -> (i32, i32, i32) {
    %c0_i32 = arith.constant 0 : i32
    %c0_i32_0 = arith.constant 0 : i32
    return %arg0, %c0_i32, %arg1 : i32, i32, i32
  }
  func.func @transform_4(%arg0: i32, %arg1: i32) -> (i32, i32, i32, i32) {
    %c0_i32 = arith.constant 0 : i32
    %c0_i32_0 = arith.constant 0 : i32
    %c0_i32_1 = arith.constant 0 : i32
    return %arg0, %arg1, %c0_i32, %c0_i32_0 : i32, i32, i32, i32
  }
}

module attributes {stable_mosaic.version = 11 : i64} {
  func.func @_finalize_kernel(%arg0: i32, %arg1: i32, %arg2: memref<1x4x16xf32, #tpu.memory_space<vmem>>, %arg3: memref<1x4x16xf32, #tpu.memory_space<vmem>>, %arg4: memref<4x2xf32, #tpu.memory_space<vmem>>, %arg5: memref<1x4x16xf32, #tpu.memory_space<vmem>>) attributes {dimension_semantics = [#tpu.dimension_semantics<parallel>, #tpu.dimension_semantics<parallel>], iteration_bounds = array<i64: 2, 1>, scalar_prefetch = 0 : i64, scratch_operands = 0 : i64, tpu.core_type = #tpu.core_type<tc>, window_params = [{transform_indices = @transform_0, window_bounds = array<i64: 1, 4, 16>}, {transform_indices = @transform_1, window_bounds = array<i64: 1, 4, 16>}, {pipeline_mode = #tpu.pipeline_mode<synchronous>, transform_indices = @transform_2, window_bounds = array<i64: 4, 2>}, {transform_indices = @transform_3, window_bounds = array<i64: 1, 4, 16>}]} {
    %c0 = arith.constant 0 : index
    %c0_0 = arith.constant 0 : index
    %c0_1 = arith.constant 0 : index
    %0 = vector.load %arg2[%c0, %c0_0, %c0_1] : memref<1x4x16xf32, #tpu.memory_space<vmem>>, vector<1x4x16xf32>
    %1 = vector.shape_cast %0 : vector<1x4x16xf32> to vector<4x16xf32>
    %c0_2 = arith.constant 0 : index
    %c0_3 = arith.constant 0 : index
    %c0_4 = arith.constant 0 : index
    %2 = vector.load %arg3[%c0_2, %c0_3, %c0_4] : memref<1x4x16xf32, #tpu.memory_space<vmem>>, vector<1x4x16xf32>
    %3 = vector.shape_cast %2 : vector<1x4x16xf32> to vector<4x16xf32>
    %c0_5 = arith.constant 0 : index
    %c0_6 = arith.constant 0 : index
    %4 = vector.load %arg4[%c0_5, %c0_6] : memref<4x2xf32, #tpu.memory_space<vmem>>, vector<4x1xf32>
    %5 = vector.broadcast %4 : vector<4x1xf32> to vector<4x16xf32>
    %6 = arith.mulf %3, %5 : vector<4x16xf32>
    %c0_7 = arith.constant 0 : index
    %c1 = arith.constant 1 : index
    %7 = vector.load %arg4[%c0_7, %c1] : memref<4x2xf32, #tpu.memory_space<vmem>>, vector<4x1xf32>
    %8 = vector.broadcast %7 : vector<4x1xf32> to vector<4x16xf32>
    %9 = arith.addf %6, %8 : vector<4x16xf32>
    %10 = arith.addf %9, %1 : vector<4x16xf32>
    %cst = arith.constant 0.000000e+00 : f32
    %11 = vector.broadcast %cst : f32 to vector<4x16xf32>
    %12 = arith.cmpf oge, %10, %11 : vector<4x16xf32>
    %cst_8 = arith.constant 2.000000e-01 : f32
    %13 = vector.broadcast %cst_8 : f32 to vector<4x16xf32>
    %14 = arith.mulf %13, %10 : vector<4x16xf32>
    %15 = arith.select %12, %10, %14 : vector<4x16xi1>, vector<4x16xf32>
    %c0_9 = arith.constant 0 : index
    %c0_10 = arith.constant 0 : index
    %c0_11 = arith.constant 0 : index
    %16 = vector.load %arg5[%c0_9, %c0_10, %c0_11] : memref<1x4x16xf32, #tpu.memory_space<vmem>>, vector<1x4x16xf32>
    %17 = vector.shape_cast %16 : vector<1x4x16xf32> to vector<4x16xf32>
    %18 = vector.shape_cast %15 : vector<4x16xf32> to vector<1x4x16xf32>
    tpu.vector_store %arg5[%c0_9, %c0_10, %c0_11], %18 {strides = array<i32>} : memref<1x4x16xf32, #tpu.memory_space<vmem>>, vector<1x4x16xf32>,
    return
  }
  func.func @transform_0(%arg0: i32, %arg1: i32) -> (i32, i32, i32) {
    %c0_i32 = arith.constant 0 : i32
    %c0_i32_0 = arith.constant 0 : i32
    return %arg0, %c0_i32, %arg1 : i32, i32, i32
  }
  func.func @transform_1(%arg0: i32, %arg1: i32) -> (i32, i32, i32) {
    %c0_i32 = arith.constant 0 : i32
    %c0_i32_0 = arith.constant 0 : i32
    return %arg0, %c0_i32, %arg1 : i32, i32, i32
  }
  func.func @transform_2(%arg0: i32, %arg1: i32) -> (i32, i32) {
    %c0_i32 = arith.constant 0 : i32
    %c0_i32_0 = arith.constant 0 : i32
    %c0_i32_1 = arith.constant 0 : i32
    return %c0_i32, %c0_i32_0 : i32, i32
  }
  func.func @transform_3(%arg0: i32, %arg1: i32) -> (i32, i32, i32) {
    %c0_i32 = arith.constant 0 : i32
    %c0_i32_0 = arith.constant 0 : i32
    return %arg0, %c0_i32, %arg1 : i32, i32, i32
  }
}

</mosaic_0001>

<bundles_post_ra>
// kernel: res_mlp_block1d.3
= control target key start
LH: loop header
LB: loop body
LE: loop exit
PB: predicated region body
PF: predicated region fallthrough
CT: control target
= control target key end

     0   :  { %6 = vsyncpa [#allocation3], 0  ;;  %s564_s0 = inlined_call_operand.hbm [shape: f32[2,4,16], index: 0, kind: input, shape index: {}]   ;;  %s565_s1 = inlined_call_operand.vmem [shape: f32[2,1,4,5], index: 1, kind: output, shape index: {}]  }
   0x1   :  { %8 = vsyncpa [#allocation3 + $0x1], 0  ;;  %s467_s6 = smov 0   ;;  %s469_s7 = smov 0  }
   0x2   :  { %s471_s8 = smov 0   ;;  %s473_s9 = smov 0  }
   0x3   :  { %s475_s10 = smov 0   ;;  %s477_s11 = smov 0  }
   0x4 LB: > { %s305_s12 = sadd.s32 4294967295, %s454_s11   ;;  %s26_s13 = sadd.s32 1, %s450_s10  ;;  %s454_s11 = sphi %s477_s11, %s14_s11   ;;  %s450_s10 = sphi %s475_s10, %s572_s10   ;;  %s446_s9 = sphi %s473_s9, %s571_s9   ;;  %s442_s8 = sphi %s471_s8, %s570_s8   ;;  %s438_s7 = sphi %s469_s7, %s569_s7   ;;  %s434_s6 = sphi %s467_s6, %s568_s6  }
   0x5   : > { %p28_p0 = scmp.ge.s32.totalorder %s26_s13, 2  ;;  %s35_s14 = sadd.s32 1, %s442_s8 }
   0x6   : > { %p42_p1 = scmp.ne.s32.totalorder %s442_s8, %s438_s7  ;;  %p43_p2 = scmp.eq.s32.totalorder %s454_s11, 0 }
   0x7   : > { %s574_s13 = smov (%p28_p0, %s26_s13), 0  ;;  %p48_p4 = scmp.ne.s32.totalorder %s438_s7, %s434_s6 }
   0x8   : > { %p503_p3 = por %p43_p2, %p42_p1  ;;  %s30_s16 = ssub.s32 %s450_s10, %s574_s13 }
   0x9   : > { %p49_p5 = scmp.eq.s32.totalorder %s305_s12, 0  ;;  %p33_p6 = scmp.eq.s32.totalorder %s30_s16, 0 }
   0xa   : > { %p322_p8 = scmp.lt.s32.totalorder %s454_s11, 2  ;;  %s100_s19 = sand.u32 1, %s442_s8  }
   0xb   : > { %p510_p7 = por %p49_p5, %p48_p4  ;;  %s310_s20 = sshll.u32 %s450_s10, 2 }
   0xc   : > { %s516_s18 = scalar_select %p33_p6, %s442_s8, %s35_s14  }
   0xd   : > { %s309_s21 = sshll.u32 %s100_s19, 2  ;;  %s109_s24 = scalar_lea.hbm %s564_s0, %s310_s20 }
   0xe   : > { %s111_s25 = sshll.u32 %s109_s24, 4  ;;  %s104_s26 = scalar_lea.vmem [#allocation2], %s309_s21  ;;  %s112_s25 = int_to_ptr.hbm [resolvable:$true] %s111_s25 }
   0xf   : > { %s113_s27 = sshll.u32 %s104_s26, 4  ;;  %p319_p9 = pnand %p322_p8, %p503_p3  ;;  %s114_s27 = int_to_ptr.vmem [resolvable:$true] %s113_s27 }
  0x10   : > { %p311_p10 = scmp.ge.s32.totalorder %s454_s11, 1  ;;  %p118_p11 = scmp.lt.s32.totalorder %s454_s11, 3 }
  0x11   : > { %s101_s28 = scalar_lea.sflag [#allocation3], %s100_s19 }
  0x12   : > { %321 = dma.hbm_to_vmem [thread:$0]  (!%p319_p9), %s112_s25, 64, %s114_s27, %s101_s28  }
  0x13   : > { %p119_p12 = pnand %p311_p10, %p118_p11 }
  0x14   : > { %s124_s29 = sand.u32 (!%p119_p12), 1, %s438_s7  }
  0x15   : > { %122 = sbr.rel (%p119_p12) target bundleno = 285 (0x11d), region = 24  ;;  %s312_s30 = sshll.u32 (!%p119_p12), %s124_s29, 2 }
  0x16   : > { %s125_s2 = scalar_lea.sflag (!%p119_p12), [#allocation3], %s124_s29  ;;  %s128_s3 = scalar_lea.vmem (!%p119_p12), [#allocation2], %s312_s30 }
  0x1a   : > { %429 = dma.done.wait (%p510_p7), %s125_s2, 64  }
  0x1b   : > { %431 = vsyncadd (%p510_p7), %s125_s2, 4294967232  ;;  %vm158_vm0 = vcmask 125952   ;;  %v157_v0 = vld [vmem:[%s128_s3] sm:$0xf]  ;;  %v456_v2 = vmov 16.0   ;;  %p150_p13 = scmp.lt.s32.totalorder %s446_s9, 1  ;;  %v205_v27 = vlaneseq }
  0x1c   : > { %v159_v1 = vsel %vm158_vm0, %v157_v0, 0.0  ;;  %372 = vrcp.f32 %v456_v2  ;;  %vm199_vm2 = vcmask 3072   ;;  %vm212_vm3 = vcmask 1041409  }
  0x1d   : > { %160 = vadd.xlane.f32.xlu0 %v159_v1  ;;  %s576_s9 = smov (!%p150_p13, %s446_s9), 1  ;;  %v206_v28 = vand.u32 127, %v205_v27  ;;  %vm214_vm4 = vcmask 1042434   ;;  %vm216_vm5 = vcmask 1043459   ;;  %vm219_vm6 = vcmask 35848  }
  0x1e   : > { %s313_s4 = sshll.u32 %s576_s9, 2 }
  0x1f   : > { %s538_s12 = scalar_lea.vmem %s565_s1, %s313_s4  ;;  %v207_v30 = vadd.s32 4294967295, %v206_v28 }
  0x22   : > { %v373_v3 = vpop.eup %372 }
  0x23   : > { %v163_v4 = vmul.f32 16.0, %v373_v3  ;;  %vm167_vm1 = vweird.f32 %v373_v3 }
  0x25   : > { %v164_v5 = vsub.f32 1.0, %v163_v4 }
  0x27   : > { %v165_v6 = vmul.f32 %v373_v3, %v164_v5 }
  0x29   : > { %v166_v7 = vadd.f32 %v373_v3, %v165_v6 }
  0x2b   : > { %v168_v8 = vsel %vm167_vm1, %v373_v3, %v166_v7 }
  0x90   : > { %v161_v9 = vpop.xlane.xlu0 %160 }
  0x91   : > { %v169_v10 = vmul.f32 %v168_v8, %v161_v9  ;;  %200 = vst.msk [vmem:[%s538_s12] sm:$0xf] %vm199_vm2, %v161_v9 }
  0x93   : > { %v170_v11 = vsub.f32 %v157_v0, %v169_v10 }
  0x95   : > { %v175_v12 = vperm.slane %v170_v11, 0  ;;  %v174_v13 = vrot.slane %v170_v11, 3  ;;  %v172_v14 = vrot.slane %v170_v11, 1  ;;  %v173_v18 = vrot.slane %v170_v11, 2 }
  0x97   : > { %v183_v15 = vmul.f32 %v175_v12, %v170_v11  ;;  %v178_v16 = vperm.slane %v174_v13, 0  ;;  %v176_v17 = vperm.slane %v172_v14, 0  ;;  %v177_v24 = vperm.slane %v173_v18, 0 }
  0x99   : > { %v187_v19 = vsel %vm158_vm0, %v183_v15, 0.0  ;;  %v186_v20 = vmul.f32 %v178_v16, %v170_v11  ;;  %v184_v21 = vmul.f32 %v176_v17, %v170_v11  ;;  %v185_v25 = vmul.f32 %v177_v24, %v170_v11 }
  0x9a   : > { %188 = vadd.xlane.f32.xlu0 %v187_v19 }
  0x9b   : > { %v196_v22 = vsel %vm158_vm0, %v186_v20, 0.0  ;;  %v190_v23 = vsel %vm158_vm0, %v184_v21, 0.0  ;;  %v193_v26 = vsel %vm158_vm0, %v185_v25, 0.0 }
  0x9c   : > { %197 = vadd.xlane.f32.xlu2 %v196_v22  ;;  %191 = vadd.xlane.f32.xlu1 %v190_v23 }
  0xa4   : > { %194 = vadd.xlane.f32.xlu1 %v193_v26 }
 0x10d   : > { %v189_v31 = vpop.xlane.xlu0 %188 }
 0x10e   : > { %v208_v34 = vperm.slane %v189_v31, %v207_v30 }
 0x10f   : > { %v192_v29 = vpop.xlane.xlu1 %191  ;;  %v198_v33 = vpop.xlane.xlu2 %197 }
 0x110   : > { %v209_v32 = vperm.slane %v192_v29, %v207_v30  ;;  %v211_v37 = vperm.slane %v198_v33, %v207_v30 }
 0x112   : > { %v213_v38 = vsel %vm212_vm3, %v209_v32, %v208_v34 }
 0x117   : > { %v195_v35 = vpop.xlane.xlu1 %194 }
 0x118   : > { %v210_v36 = vperm.slane %v195_v35, %v207_v30 }
 0x11a   : > { %v215_v39 = vsel %vm214_vm4, %v210_v36, %v213_v38 }
 0x11b   : > { %v217_v40 = vsel %vm216_vm5, %v211_v37, %v215_v39 }
 0x11c   : > { %220 = vst.msk [vmem:[%s538_s12] sm:$0xf] %vm219_vm6, %v217_v40 }
 0x11d PF: > { %s14_s11 = sadd.s32 1, %s454_s11   ;;  %s568_s6 = smov %s438_s7 }
 0x11e   : > { %p11_p0 = scmp.ge.s32.totalorder %s14_s11, 4   ;;  %s569_s7 = smov %s442_s8 }
 0x11f   : > { %s570_s8 = smov %s516_s18  ;;  %s571_s9 = smov %s450_s10 }
 0x120   : > { %s572_s10 = smov %s574_s13  ;;  %13 = sbr.rel (!%p11_p0) target bundleno = 4 (0x4), region = 64 }
 0x125   :  { %246 = vsyncpa [#allocation3], 1 }
 0x126   :  { %248 = vsyncpa [#allocation3 + $0x1], 1 }

// kernel: res_mlp_block1d.5
= control target key start
LH: loop header
LB: loop body
LE: loop exit
PB: predicated region body
PF: predicated region fallthrough
CT: control target
= control target key end

     0   :  { %8 = vsyncpa [#allocation3], 0  ;;  %s618_s0 = inlined_call_operand.vmem [shape: f32[2,4,16], index: 0, kind: input, shape index: {}]   ;;  %s619_s1 = inlined_call_operand.vmem [shape: f32[2,4,16], index: 1, kind: input, shape index: {}]   ;;  %s620_s2 = inlined_call_operand.vmem [shape: f32[4,2], index: 2, kind: input, shape index: {}]   ;;  %s621_s3 = inlined_call_operand.hbm [shape: f32[2,4,16], index: 3, kind: output, shape index: {}]  }
   0x1   :  { %10 = vsyncpa [#allocation3 + $0x1], 0  ;;  %s515_s12 = smov 0   ;;  %s517_s13 = smov 0  }
   0x2   :  { %s519_s14 = smov 0   ;;  %s521_s15 = smov 0  }
   0x3   :  { %s523_s16 = smov 0   ;;  %s525_s17 = smov 0  }
   0x4 LB: > { %s342_s18 = sadd.s32 4294967295, %s491_s17   ;;  %s343_s19 = sadd.s32 4294967294, %s491_s17   ;;  %s491_s17 = sphi %s525_s17, %s16_s17   ;;  %s487_s16 = sphi %s523_s16, %s628_s16   ;;  %s483_s15 = sphi %s521_s15, %s627_s15   ;;  %s479_s14 = sphi %s519_s14, %s626_s14   ;;  %s475_s13 = sphi %s517_s13, %s625_s13   ;;  %s471_s12 = sphi %s515_s12, %s624_s12  }
   0x5   : > { %s28_s20 = sadd.s32 1, %s487_s16  ;;  %s114_s21 = sadd.s32 1, %s479_s14 }
   0x6   : > { %p30_p0 = scmp.ge.s32.totalorder %s28_s20, 2  ;;  %p124_p1 = scmp.ne.s32.totalorder %s479_s14, %s475_s13 }
   0x7   : > { %p125_p2 = scmp.eq.s32.totalorder %s342_s18, 1  ;;  %p130_p3 = scmp.ne.s32.totalorder %s475_s13, %s471_s12 }
   0x8   : > { %s630_s20 = smov (%p30_p0, %s28_s20), 0  ;;  %p131_p5 = scmp.eq.s32.totalorder %s343_s19, 1 }
   0x9   : > { %p555_p4 = por %p125_p2, %p124_p1  ;;  %s109_s23 = ssub.s32 %s487_s16, %s630_s20 }
   0xa   : > { %p346_p6 = scmp.ge.s32.totalorder %s491_s17, 1  ;;  %p112_p7 = scmp.eq.s32.totalorder %s109_s23, 0 }
   0xb   : > { %p562_p8 = por %p131_p5, %p130_p3  ;;  %p172_p9 = scmp.lt.s32.totalorder %s491_s17, 3 }
   0xc   : > { %s568_s25 = scalar_select %p112_p7, %s479_s14, %s114_s21  }
   0xd   : > { %p173_p10 = pnand %p346_p6, %p172_p9 }
   0xe   : > { %p205_p11 = scmp.lt.s32.totalorder (!%p173_p10), %s483_s15, 1  ;;  %s202_s6 = sand.u32 (!%p173_p10), 1, %s475_s13  }
   0xf   : > { %176 = sbr.rel (%p173_p10) target bundleno = 156 (0x9c), region = 32  ;;  %s347_s7 = sshll.u32 (!%p173_p10), %s202_s6, 2 }
  0x10   : > { %s351_s11 = sshll.u32 (!%p173_p10), %s483_s15, 2  ;;  %s204_s23 = scalar_lea.vmem (!%p173_p10), [#allocation2], %s347_s7 }
  0x11   : > { %s251_s21 = scalar_lea.hbm (!%p173_p10), %s621_s3, %s351_s11  ;;  %s253_s26 = sshll.u32 (!%p173_p10), %s204_s23, 4  ;;  %s254_s26 = int_to_ptr.vmem [resolvable:$true] %s253_s26 }
  0x12   : > { %s255_s27 = sshll.u32 (!%p173_p10), %s251_s21, 4  ;;  %s256_s27 = int_to_ptr.hbm [resolvable:$true] %s255_s27 }
  0x14   : > { %v221_v0 = vld [vmem:[%s620_s2] sm:$0xf]  ;;  %v493_v1 = vmov 0   ;;  %v494_v2 = vmov 1   ;;  %s206_s28 = scalar_select %p205_p11, %s483_s15, 1  ;;  %vm237_vm1 = vcmask 125952  }
  0x15   : > { %411 = vset.pattern.permute.xlu0 %v493_v1  ;;  %s240_s15 = scalar_lea.sflag [#allocation3], %s202_s6 }
  0x16   : > { %224 = vperm.xlu0 %411, %v221_v0   ;;  %s348_s29 = sshll.u32 %s206_s28, 2  ;;  %s427_s28 = sshra.s32 %s256_s27, 4  ;;  %s428_s28 = int_to_ptr.hbm [resolvable:$true] %s427_s28 }
  0x17   : > { %s218_s5 = scalar_lea.vmem %s619_s1, %s348_s29  ;;  %s211_s10 = scalar_lea.vmem %s618_s0, %s348_s29 }
  0x18   : > { %v220_v4 = vld [vmem:[%s218_s5] sm:$0xf]  ;;  %s429_s29 = scalar_lea.hbm %s428_s28, 4  ;;  %s433_s5 = scalar_lea.hbm %s621_s3, 8 }
  0x19   : > { %v219_v7 = vld [vmem:[%s211_s10] sm:$0xf]  ;;  %p430_p12 = scmp.ne.s32.totalorder %s428_s28, %s429_s29  ;;  %p434_p1 = scmp.lt.s32.totalorder %s428_s28, %s621_s3 }
  0x1a   : > { %p435_p2 = scmp.lt.s32.totalorder %s433_s5, %s429_s29 }
  0x1b   : > { %p431_p13 = pnand %p430_p12, %p555_p4 }
  0x1c   : > { %p436_p3 = por %p435_p2, %p434_p1 }
  0x1d   : > { %p432_p0 = pneg %p431_p13 }
  0x1e   : > { %412 = vset.pattern.permute.xlu0 %v494_v2 }
  0x1f   : > { %229 = vperm.xlu0 %412, %v221_v0   ;;  %p437_p5 = pnand %p436_p3, %p432_p0 }
  0x88   : > { %v225_v3 = vpop.permute.xlu0 %224 }
  0x89   : > { %v227_v5 = vmul.f32 %v225_v3, %v220_v4 }
  0x91   : > { %v230_v6 = vpop.permute.xlu0 %229 }
  0x92   : > { %v232_v8 = vadd.f32 %v230_v6, %v227_v5 }
  0x94   : > { %v233_v9 = vadd.f32 %v232_v8, %v219_v7 }
  0x96   : > { %vm234_vm0 = vcmp.ge.f32.partialorder %v233_v9, 0.0  ;;  %v235_v10 = vmul.f32 0.2, %v233_v9 }
  0x98   : > { %v236_v11 = vsel %vm234_vm0, %v233_v9, %v235_v10 }
  0x99   : > { %238 = vst.msk [vmem:[%s204_s23] sm:$0xf] %vm237_vm1, %v236_v11 }
  0x9a   : > { %440 = shalt.err (!%p437_p5)
}
  0x9b   : > { %354 = dma.vmem_to_hbm [thread:$0]  (%p555_p4), %s254_s26, 64, %s256_s27, %s240_s15  }
  0x9c PF: > { %p360_p6 = scmp.ge.s32.totalorder %s491_s17, 2  ;;  %s267_s6 = sand.u32 1, %s471_s12  }
  0x9d   : > { %s268_s9 = scalar_lea.sflag [#allocation3], %s267_s6 }
  0x9e   : > { %p357_p7 = pnand %p360_p6, %p562_p8 }
  0xa0   : > { %p358_p9 = pneg %p357_p7 }
  0xa2   : > { %466 = dma.done.wait (%p358_p9), %s268_s9, 64  }
  0xa3   : > { %468 = vsyncadd (%p358_p9), %s268_s9, 4294967232  ;;  %s16_s17 = sadd.s32 1, %s491_s17   ;;  %s624_s12 = smov %s475_s13 }
  0xa4   : > { %p13_p10 = scmp.ge.s32.totalorder %s16_s17, 4   ;;  %s625_s13 = smov %s479_s14 }
  0xa5   : > { %s626_s14 = smov %s568_s25  ;;  %s627_s15 = smov %s487_s16 }
  0xa6   : > { %s628_s16 = smov %s630_s20  ;;  %15 = sbr.rel (!%p13_p10) target bundleno = 4 (0x4), region = 70 }
  0xab   :  { %274 = vsyncpa [#allocation3], 1 }
  0xac   :  { %276 = vsyncpa [#allocation3 + $0x1], 1 }

// kernel: res_mlp_block1d.4
= control target key start
LH: loop header
LB: loop body
LE: loop exit
PB: predicated region body
PF: predicated region fallthrough
CT: control target
= control target key end

     0   :  { %s657_s15 = smov 0   ;;  %s659_s16 = smov 0   ;;  %s720_s0 = inlined_call_operand.vmem [shape: f32[2,4,16], index: 0, kind: input, shape index: {}]   ;;  %s721_s1 = inlined_call_operand.vmem [shape: f32[32,5], index: 1, kind: input, shape index: {}]   ;;  %s722_s2 = inlined_call_operand.vmem [shape: f32[4,32], index: 2, kind: input, shape index: {}]   ;;  %s723_s3 = inlined_call_operand.vmem [shape: f32[2,4,16], index: 3, kind: output, shape index: {0}]   ;;  %s724_s4 = inlined_call_operand.vmem [shape: f32[2,1,4,2], index: 4, kind: output, shape index: {1}]  }
   0x1   :  { %s661_s17 = smov 0  }
   0x2 LB: > { %s27_s18 = sadd.s32 1, %s620_s16  ;;  %p546_p0 = scmp.ge.s32.totalorder %s624_s17, 1  ;;  %s624_s17 = sphi %s661_s17, %s15_s17   ;;  %s620_s16 = sphi %s659_s16, %s726_s16   ;;  %s616_s15 = sphi %s657_s15, %s725_s15  }
   0x3   : > { %p29_p1 = scmp.ge.s32.totalorder %s27_s18, 2  ;;  %p185_p2 = scmp.lt.s32.totalorder %s624_s17, 3 }
   0x5   : > { %s728_s18 = smov (%p29_p1, %s27_s18), 0  ;;  %p186_p3 = pnand %p546_p0, %p185_p2 }
   0x6   : > { %p222_p4 = scmp.lt.s32.totalorder (!%p186_p3), %s616_s15, 1 }
   0x7   : > { %189 = sbr.rel (%p186_p3) target bundleno = 564 (0x234), region = 32 }
   0xc   : > { %v247_v0 = vld [vmem:[%s721_s1 + $0x18] sm:$0xff]  ;;  %v246_v1 = vld [vmem:[%s721_s1 + $0x10] sm:$0xff]  ;;  %v626_v2 = vmov 2   ;;  %v627_v3 = vmov 0   ;;  %v245_v4 = vld [vmem:[%s721_s1 + $0x8] sm:$0xff]  ;;  %v628_v5 = vmov 1  }
   0xd   : > { %587 = vset.pattern.permute.xlu2 %v626_v2  ;;  %585 = vset.pattern.permute.xlu1 %v627_v3  ;;  %v629_v6 = vmov 3   ;;  %v244_v7 = vld [vmem:[%s721_s1] sm:$0xff]  ;;  %v630_v8 = vmov 4   ;;  %s730_s15 = smov (!%p222_p4, %s616_s15), 1  ;;  %vm381_vm4 = vcmask 261120   ;;  %vm405_vm5 = vcmask 125952  }
   0xe   : > { %583 = vset.pattern.permute.xlu0 %v627_v3  ;;  %311 = vperm.xlu2 %587, %v247_v0   ;;  %s691_s27 = sshll.u32 %s730_s15, 2  ;;  %vm419_vm7 = vcmask 3072   ;;  %vm425_vm8 = vcmask 11272  }
   0xf   : > { %265 = vperm.xlu0 %583, %v247_v0   ;;  %260 = vperm.xlu1 %585, %v246_v1   ;;  %s228_s30 = scalar_lea.vmem %s720_s0, %s691_s27  ;;  %s235_s9 = scalar_lea.vmem %s723_s3, %s691_s27 }
  0x10   : > { %v243_v15 = vld [vmem:[%s228_s30] sm:$0xf]  ;;  %s242_s12 = scalar_lea.vmem %s724_s4, %s691_s27 }
  0x11   : > { %v289_v16 = vperm.slane %v243_v15, 1  ;;  %v268_v17 = vperm.slane %v243_v15, 0  ;;  %v314_v22 = vperm.slane %v243_v15, 2  ;;  %v339_v27 = vperm.slane %v243_v15, 3 }
  0x16   : > { %588 = vset.pattern.permute.xlu2 %v627_v3 }
  0x17   : > { %584 = vset.pattern.permute.xlu0 %v628_v5  ;;  %586 = vset.pattern.permute.xlu1 %v628_v5 }
  0x18   : > { %286 = vperm.xlu0 %584, %v247_v0   ;;  %282 = vperm.xlu1 %586, %v246_v1  }
  0x19   : > { %255 = vperm.xlu2 %588, %v245_v4  }
  0x20   : > { %590 = vset.pattern.permute.xlu0 %v629_v6  ;;  %278 = vperm.xlu1 %586, %v245_v4  }
  0x21   : > { %589 = vset.pattern.permute.xlu2 %v626_v2  ;;  %336 = vperm.xlu0 %590, %v247_v0  }
  0x22   : > { %307 = vperm.xlu2 %589, %v246_v1  }
  0x28   : > { %591 = vset.pattern.permute.xlu1 %v627_v3 }
  0x29   : > { %250 = vperm.xlu1 %591, %v244_v7   ;;  %595 = vset.pattern.permute.xlu0 %v626_v2 }
  0x2a   : > { %592 = vset.pattern.permute.xlu2 %v628_v5  ;;  %299 = vperm.xlu0 %595, %v244_v7  }
  0x2b   : > { %274 = vperm.xlu2 %592, %v244_v7  }
  0x31   : > { %593 = vset.pattern.permute.xlu1 %v626_v2 }
  0x32   : > { %303 = vperm.xlu1 %593, %v245_v4   ;;  %598 = vset.pattern.permute.xlu0 %v630_v8 }
  0x33   : > { %594 = vset.pattern.permute.xlu2 %v629_v6  ;;  %353 = vperm.xlu0 %598, %v245_v4  }
  0x34   : > { %332 = vperm.xlu2 %594, %v246_v1  }
  0x3a   : > { %596 = vset.pattern.permute.xlu1 %v629_v6 }
  0x3b   : > { %328 = vperm.xlu1 %596, %v245_v4  }
  0x3c   : > { %597 = vset.pattern.permute.xlu2 %v630_v8 }
  0x3d   : > { %361 = vperm.xlu2 %597, %v247_v0  }
  0x43   : > { %324 = vperm.xlu1 %596, %v244_v7  }
  0x45   : > { %357 = vperm.xlu2 %597, %v246_v1  }
  0x4b   : > { %599 = vset.pattern.permute.xlu1 %v630_v8 }
  0x4c   : > { %349 = vperm.xlu1 %599, %v244_v7  }
  0x68   : > { %v312_v9 = vpop.permute.xlu2 %311 }
  0x69   : > { %v318_v25 = vmul.f32 %v314_v22, %v312_v9  ;;  %v380_v9 = vld [vmem:[%s722_s2] sm:$0xf] }
  0x73   : > { %v256_v10 = vpop.permute.xlu2 %255 }
  0x74   : > { %v270_v51 = vmul.f32 %v268_v17, %v256_v10 }
  0x7c   : > { %v308_v11 = vpop.permute.xlu2 %307 }
  0x7d   : > { %v317_v33 = vmul.f32 %v314_v22, %v308_v11 }
  0x81   : > { %v261_v12 = vpop.permute.xlu1 %260  ;;  %v266_v13 = vpop.permute.xlu0 %265 }
  0x82   : > { %v272_v20 = vmul.f32 %v268_v17, %v266_v13  ;;  %v271_v30 = vmul.f32 %v268_v17, %v261_v12  ;;  %v631_v13 = vmov 16.0  }
  0x83   : > { %600 = vrcp.f32 %v631_v13 }
  0x85   : > { %v275_v14 = vpop.permute.xlu2 %274 }
  0x86   : > { %v290_v60 = vmul.f32 %v289_v16, %v275_v14 }
  0x89   : > { %v601_v14 = vpop.eup %600 }
  0x8a   : > { %v287_v18 = vpop.permute.xlu0 %286  ;;  %v283_v19 = vpop.permute.xlu1 %282  ;;  %v411_v15 = vmul.f32 16.0, %v601_v14  ;;  %vm415_vm6 = vweird.f32 %v601_v14 }
  0x8b   : > { %v293_v21 = vmul.f32 %v289_v16, %v287_v18  ;;  %v292_v26 = vmul.f32 %v289_v16, %v283_v19 }
  0x8d   : > { %v297_v24 = vadd.f32 %v293_v21, %v272_v20  ;;  %v296_v34 = vadd.f32 %v292_v26, %v271_v30 }
  0x8e   : > { %v333_v23 = vpop.permute.xlu2 %332 }
  0x8f   : > { %v322_v32 = vadd.f32 %v318_v25, %v297_v24  ;;  %v342_v38 = vmul.f32 %v339_v27, %v333_v23  ;;  %v321_v40 = vadd.f32 %v317_v33, %v296_v34 }
  0x91   : > { %v346_v43 = vadd.f32 %v342_v38, %v321_v40 }
  0x92   : > { %v279_v28 = vpop.permute.xlu1 %278 }
  0x93   : > { %v337_v29 = vpop.permute.xlu0 %336  ;;  %v291_v50 = vmul.f32 %v289_v16, %v279_v28  ;;  %v412_v16 = vsub.f32 1.0, %v411_v15 }
  0x94   : > { %v343_v31 = vmul.f32 %v339_v27, %v337_v29 }
  0x95   : > { %v295_v53 = vadd.f32 %v291_v50, %v270_v51 }
  0x96   : > { %v347_v35 = vadd.f32 %v343_v31, %v322_v32 }
  0x97   : > { %v362_v36 = vpop.permute.xlu2 %361 }
  0x98   : > { %v367_v37 = vadd.f32 %v362_v36, %v347_v35 }
  0x9a   : > { %vm371_vm0 = vcmp.ge.f32.partialorder %v367_v37, 0.0  ;;  %v375_v39 = vmul.f32 0.2, %v367_v37 }
  0x9b   : > { %v251_v41 = vpop.permute.xlu1 %250 }
  0x9c   : > { %v379_v42 = vsel %vm371_vm0, %v367_v37, %v375_v39  ;;  %v300_v49 = vpop.permute.xlu0 %299  ;;  %v269_v61 = vmul.f32 %v268_v17, %v251_v41  ;;  %v413_v17 = vmul.f32 %v601_v14, %v412_v16 }
  0x9d   : > { %397 = vmatpush.msra.mxu0 %v379_v42  ;;  %v315_v2 = vmul.f32 %v314_v22, %v300_v49 }
  0x9e   : > { %v294_v1 = vadd.f32 %v290_v60, %v269_v61  ;;  %v414_v18 = vadd.f32 %v601_v14, %v413_v17 }
  0x9f   : > { %v358_v44 = vpop.permute.xlu2 %357 }
  0xa0   : > { %v366_v45 = vadd.f32 %v358_v44, %v346_v43  ;;  %v319_v4 = vadd.f32 %v315_v2, %v294_v1  ;;  %v416_v19 = vsel %vm415_vm6, %v601_v14, %v414_v18 }
  0xa2   : > { %vm370_vm1 = vcmp.ge.f32.partialorder %v366_v45, 0.0  ;;  %v374_v46 = vmul.f32 0.2, %v366_v45 }
  0xa4   : > { %v304_v47 = vpop.permute.xlu1 %303  ;;  %v378_v48 = vsel %vm370_vm1, %v366_v45, %v374_v46 }
  0xa5   : > { %398 = vmatpush.msra.mxu0 %v378_v48  ;;  %v316_v52 = vmul.f32 %v314_v22, %v304_v47  ;;  %v354_v57 = vpop.permute.xlu0 %353 }
  0xa7   : > { %v320_v55 = vadd.f32 %v316_v52, %v295_v53 }
  0xad   : > { %v329_v54 = vpop.permute.xlu1 %328 }
  0xae   : > { %v341_v56 = vmul.f32 %v339_v27, %v329_v54 }
  0xb0   : > { %v345_v58 = vadd.f32 %v341_v56, %v320_v55 }
  0xb2   : > { %v365_v59 = vadd.f32 %v354_v57, %v345_v58 }
  0xb4   : > { %vm369_vm2 = vcmp.ge.f32.partialorder %v365_v59, 0.0  ;;  %v373_v62 = vmul.f32 0.2, %v365_v59 }
  0xb5   : > { %v325_v63 = vpop.permute.xlu1 %324 }
  0xb6   : > { %v377_v0 = vsel %vm369_vm2, %v365_v59, %v373_v62  ;;  %v340_v3 = vmul.f32 %v339_v27, %v325_v63 }
  0xb7   : > { %399 = vmatpush.msra.mxu0 %v377_v0 }
  0xb8   : > { %v344_v5 = vadd.f32 %v340_v3, %v319_v4 }
  0xbe   : > { %v350_v6 = vpop.permute.xlu1 %349 }
  0xbf   : > { %v364_v7 = vadd.f32 %v350_v6, %v344_v5 }
  0xc1   : > { %vm368_vm3 = vcmp.ge.f32.partialorder %v364_v7, 0.0  ;;  %v372_v8 = vmul.f32 0.2, %v364_v7 }
  0xc3   : > { %v376_v10 = vsel %vm368_vm3, %v364_v7, %v372_v8 }
  0xc4   : > { %400 = vmatpush.msra.mxu0 %v376_v10 }
  0xc5   : > { %550 = vmatmul.msk.f32.vlgmr.msra.gmra.mxu0 %vm381_vm4, %v380_v9 }
 0x142   : > { %v402_v11 = vpop.f32.mrf.mxu0 }
 0x143   : > { %406 = vst.msk [vmem:[%s235_s9] sm:$0xf] %vm405_vm5, %v402_v11  ;;  %v407_v12 = vsel %vm405_vm5, %v402_v11, 0.0 }
 0x144   : > { %408 = vadd.xlane.f32.xlu2 %v407_v12 }
 0x1b7   : > { %v409_v20 = vpop.xlane.xlu2 %408 }
 0x1b8   : > { %v417_v21 = vmul.f32 %v416_v19, %v409_v20  ;;  %420 = vst.msk [vmem:[%s242_s12] sm:$0xf] %vm419_vm7, %v409_v20 }
 0x1ba   : > { %v418_v22 = vsub.f32 %v402_v11, %v417_v21 }
 0x1bc   : > { %v421_v23 = vmul.f32 %v418_v22, %v418_v22 }
 0x1be   : > { %v422_v24 = vsel %vm405_vm5, %v421_v23, 0.0 }
 0x1bf   : > { %423 = vadd.xlane.f32.xlu1 %v422_v24 }
 0x232   : > { %v424_v25 = vpop.xlane.xlu1 %423 }
 0x233   : > { %426 = vst.msk [vmem:[%s242_s12] sm:$0xf] %vm425_vm8, %v424_v25 }
 0x234 PF: > { %s15_s17 = sadd.s32 1, %s624_s17   ;;  %s725_s15 = smov %s620_s16 }
 0x235   : > { %p12_p5 = scmp.ge.s32.totalorder %s15_s17, 4   ;;  %s726_s16 = smov %s728_s18 }
 0x237   :  { %14 = sbr.rel (!%p12_p5) target bundleno = 2 (0x2), region = 74 }

</bundles_post_ra>
